<compile_context>
chip_gen: v5e
topology: v5e:2x2
jax: 0.10.0
libtpu: 0.0.40
codegen_flags: <defaults>
</compile_context>

<pallas_src>
import math
import numpy as np
import jax
import jax.numpy as jnp
from jax import lax
from jax.experimental import pallas as pl
from jax.experimental.pallas import tpu as pltpu


def make_kernel(num_heads: int):
    H = num_heads

    def kernel(cls_ref, tac_ref, w_ref, vec_ref, cls_out_ref, tac_out_ref):
        B, T, D = tac_ref.shape          # batch block, tactile len, embed dim
        dh = D // H
        mm = w_ref.dtype                 # matmul operand dtype (bf16 in prod)
        fuse = (D % 128 == 0)            # lane-aligned slices of fused results

        cls = cls_ref[...]               # (B, D)   f32 CLS tokens
        tac = tac_ref[...]               # (B, T, D) f32 tactile tokens

        # weight slab columns: [Wq2*s | Wv1 | Wk2 | Wv2 | Wo2 | Wo1]
        def wcols(a, b):
            return w_ref[:, a * D:b * D]

        def vrow(i):                     # (1, D) f32 rows of the vector slab
            return vec_ref[i:i + 1, :]

        bq2, bk2, bv2, bo2 = vrow(0), vrow(1), vrow(2), vrow(3)
        bv1, bo1 = vrow(4), vrow(5)
        lnt_w, lnt_b, lni_w, lni_b = vrow(6), vrow(7), vrow(8), vrow(9)

        def layernorm(x, w, b, eps=1e-5):
            mu = jnp.mean(x, axis=-1, keepdims=True)
            xc = x - mu
            var = jnp.mean(xc * xc, axis=-1, keepdims=True)
            return xc * lax.rsqrt(var + eps) * w + b

        def mxdot(a, b):                 # bf16 (or slab-dtype) MXU, f32 acc
            return jnp.dot(a.astype(mm), b.astype(mm),
                           preferred_element_type=jnp.float32)

        # Block-diagonal head selectors built in-kernel (VPU iota compares).
        one, zero = jnp.float32(1.0), jnp.float32(0.0)
        d_ix = lax.broadcasted_iota(jnp.int32, (D, H), 0)
        h_ix = lax.broadcasted_iota(jnp.int32, (D, H), 1)
        hsum = jnp.where((d_ix >= h_ix * dh) & (d_ix < (h_ix + 1) * dh),
                         one, zero).astype(mm)                     # (D, H)
        h_ix2 = lax.broadcasted_iota(jnp.int32, (H, D), 0)
        d_ix2 = lax.broadcasted_iota(jnp.int32, (H, D), 1)
        hexp = jnp.where((d_ix2 >= h_ix2 * dh) & (d_ix2 < (h_ix2 + 1) * dh),
                         one, zero).astype(mm)                     # (H, D)

        # ---- cls-side projections: q (i2t, pre-scaled) + v (t2i), fused.
        if fuse:
            qv = mxdot(cls, wcols(0, 2))                 # (B, 2D)
            q2 = qv[:, 0:D] + bq2
            v1 = qv[:, D:2 * D] + bv1
        else:
            q2 = mxdot(cls, wcols(0, 1)) + bq2           # (B, D)
            v1 = mxdot(cls, wcols(1, 2)) + bv1           # (B, D)

        # ---- MHA-1 (tactile queries -> single CLS key): softmax == 1 exactly.
        o1 = mxdot(v1, wcols(5, 6)) + bo1                # (B, D)
        tac_new = layernorm(tac + o1[:, None, :], lnt_w, lnt_b)     # (B, T, D)
        tac_out_ref[...] = tac_new

        # ---- MHA-2 (CLS query -> tactile keys/values), all heads at once.
        tacf = tac_new.reshape(B * T, D)
        if fuse:
            kv = mxdot(tacf, wcols(2, 4))                # (B*T, 2D)
            k2 = kv[:, 0:D] + bk2
            v2 = kv[:, D:2 * D] + bv2
        else:
            k2 = mxdot(tacf, wcols(2, 3)) + bk2          # (B*T, D)
            v2 = mxdot(tacf, wcols(3, 4)) + bv2          # (B*T, D)

        # per-(batch, head) scores via block-diagonal segment-sum on the MXU
        prod = (q2[:, None, :] * k2.reshape(B, T, D)).reshape(B * T, D)
        s = mxdot(prod, hsum)                            # (B*T, H)
        s3 = s.reshape(B, T, H)
        m = jnp.max(s3, axis=1, keepdims=True)
        e = jnp.exp(s3 - m)
        denom = jnp.sum(e, axis=1, keepdims=True)
        p3 = e * pl.reciprocal(denom, approx=True)       # (B, T, H), EUP divide

        # expand head weights back to D lanes and contract over T
        pf = mxdot(p3.reshape(B * T, H), hexp)           # (B*T, D)
        ctx = jnp.sum(pf.reshape(B, T, D) * v2.reshape(B, T, D), axis=1)  # (B, D)

        o2 = mxdot(ctx, wcols(4, 5)) + bo2               # (B, D)
        cls_out_ref[...] = layernorm(cls + o2, lni_w, lni_b)

    return kernel


def cross_attention_block_cls(image_tokens, tactile_tokens, params, num_heads,
                              batch_block=None, weights_dtype=jnp.bfloat16):
    B, N, D = image_tokens.shape
    _, T, _ = tactile_tokens.shape
    H = num_heads
    dh = D // H
    scale = 1.0 / math.sqrt(dh)

    w_item = np.dtype(weights_dtype).itemsize
    w_bytes = 6 * D * D * w_item

    # v7x guidance: split the batch across TensorCores only when per-core
    # activation traffic (tac in+out) exceeds the weight slab each core would
    # stream independently; otherwise keep grid=(1,).
    if batch_block is None:
        act_bytes = B * T * D * 4 * 2
        if B % 2 == 0 and (B // 2) % 8 == 0 and (act_bytes // 2) > w_bytes:
            bb = B // 2
        else:
            bb = B
    else:
        bb = batch_block
    assert B % bb == 0, "batch_block must divide batch"
    assert bb == B or bb % 8 == 0, "(8,128) rule on the (bb, D) cls blocks"
    grid = (B // bb,)

    # --- parameter packing (host/XLA side, once) -------------------------
    # fold 1/sqrt(dh) query scale into Wq/bq of the i2t attention; bf16 slab.
    w_packed = jnp.concatenate(
        [params["wq_i2t"] * scale, params["wv_t2i"],
         params["wk_i2t"], params["wv_i2t"],
         params["wo_i2t"], params["wo_t2i"]], axis=1).astype(weights_dtype)  # (D, 6D)
    vec_packed = jnp.concatenate(
        [params["bq_i2t"] * scale, params["bk_i2t"], params["bv_i2t"],
         params["bo_i2t"], params["bv_t2i"], params["bo_t2i"],
         params["ln_tact_w"], params["ln_tact_b"],
         params["ln_img_w"], params["ln_img_b"]], axis=0)                    # (10, D) f32

    cls_in = image_tokens[:, 0, :]                                           # (B, D)

    # VMEM budget: double-buffered activation blocks + (conservatively
    # double-counted) constants, clamped to v7x's 64 MiB physical VMEM.
    blk_bytes = bb * D * 4 * 2 + bb * T * D * 4 * 2
    const_bytes = w_bytes + 10 * D * 4
    vmem_limit = int(min(max(2 * (const_bytes + blk_bytes) + (4 << 20),
                             16 << 20), 64 << 20))

    flops = (2 * B * D * 2 * D          # cls q/v projections
             + 2 * B * D * D            # t2i output projection
             + 2 * B * T * D * 2 * D    # tactile k/v projections
             + 2 * 2 * B * T * D * H    # head segment-sum + head expand
             + 2 * B * D * D            # i2t output projection
             + 12 * B * T * D)          # LN / softmax / residual elementwise
    transcendentals = B * T * H + 2 * B * T + 2 * B
    bytes_accessed = (6 * D * D * w_item + 10 * D * 4
                      + (B * D + B * T * D) * 4 * 2)
    cost = pl.CostEstimate(flops=int(flops),
                           transcendentals=int(transcendentals),
                           bytes_accessed=int(bytes_accessed))

    cls_new, tac_new = pl.pallas_call(
        make_kernel(H),
        out_shape=(jax.ShapeDtypeStruct((B, D), jnp.float32),
                   jax.ShapeDtypeStruct((B, T, D), jnp.float32)),
        grid=grid,
        in_specs=[
            pl.BlockSpec((bb, D), lambda i: (i, 0)),
            pl.BlockSpec((bb, T, D), lambda i: (i, 0, 0)),
            # grid-invariant constants (index_map is constant -> fetched once)
            pl.BlockSpec((D, 6 * D), lambda i: (0, 0)),
            pl.BlockSpec((10, D), lambda i: (0, 0)),
        ],
        out_specs=(
            pl.BlockSpec((bb, D), lambda i: (i, 0)),
            pl.BlockSpec((bb, T, D), lambda i: (i, 0, 0)),
        ),
        compiler_params=pltpu.CompilerParams(
            dimension_semantics=("parallel",),
            vmem_limit_bytes=vmem_limit),
        cost_estimate=cost,
    )(cls_in, tactile_tokens, w_packed, vec_packed)

    # Patch tokens are untouched: in-place row update of the CLS row (aliases
    # the input buffer when image_tokens is donated under jit) instead of a
    # full-tensor concatenate.
    img_out = image_tokens.at[:, 0, :].set(cls_new)
    # t2i attention over a single CLS key: weights are identically 1.0
    # (average_attn_weights=False -> shape (B, H, T, 1)).
    attn_w = jnp.ones((B, H, T, 1), dtype=jnp.float32)
    return img_out, tac_new, attn_w


def init_params(key, D):
    keys = jax.random.split(key, 16)

    def w(k):
        return (0.02 * jax.random.normal(k, (D, D))).astype(jnp.float32)

    def b(k):
        return (0.02 * jax.random.normal(k, (1, D))).astype(jnp.float32)

    params = {
        "wq_t2i": w(keys[0]), "wk_t2i": w(keys[1]), "wv_t2i": w(keys[2]),
        "bq_t2i": b(keys[3]), "bk_t2i": b(keys[4]), "bv_t2i": b(keys[5]),
        "wo_t2i": w(keys[6]), "bo_t2i": b(keys[7]),
        "wq_i2t": w(keys[8]), "wk_i2t": w(keys[9]), "wv_i2t": w(keys[10]),
        "bq_i2t": b(keys[11]), "bk_i2t": b(keys[12]), "bv_i2t": b(keys[13]),
        "wo_i2t": w(keys[14]), "bo_i2t": b(keys[15]),
        "ln_tact_w": jnp.ones((1, D), jnp.float32),
        "ln_tact_b": jnp.zeros((1, D), jnp.float32),
        "ln_img_w": jnp.ones((1, D), jnp.float32),
        "ln_img_b": jnp.zeros((1, D), jnp.float32),
    }
    return params


def reference_cls(image_tokens, tactile_tokens, params, H):
    """Pure-JAX reference mirroring torch.nn.MultiheadAttention semantics
    (computes the degenerate t2i softmax in full, all f32)."""
    def mha(q_in, kv_in, pfx):
        B, Lq, D = q_in.shape
        S = kv_in.shape[1]
        dh = D // H
        q = q_in @ params[f"wq_{pfx}"] + params[f"bq_{pfx}"]
        k = kv_in @ params[f"wk_{pfx}"] + params[f"bk_{pfx}"]
        v = kv_in @ params[f"wv_{pfx}"] + params[f"bv_{pfx}"]
        q = q.reshape(B, Lq, H, dh).transpose(0, 2, 1, 3) * (dh ** -0.5)
        k = k.reshape(B, S, H, dh).transpose(0, 2, 1, 3)
        v = v.reshape(B, S, H, dh).transpose(0, 2, 1, 3)
        s = jnp.einsum("bhqd,bhkd->bhqk", q, k)
        p = jax.nn.softmax(s, axis=-1)
        ctx = jnp.einsum("bhqk,bhkd->bhqd", p, v)
        ctx = ctx.transpose(0, 2, 1, 3).reshape(B, Lq, D)
        out = ctx @ params[f"wo_{pfx}"] + params[f"bo_{pfx}"]
        return out, p

    def ln(x, w, b, eps=1e-5):
        mu = jnp.mean(x, axis=-1, keepdims=True)
        xc = x - mu
        var = jnp.mean(xc * xc, axis=-1, keepdims=True)
        return xc / jnp.sqrt(var + eps) * w + b

    cls_tok = image_tokens[:, :1, :]
    patch_tok = image_tokens[:, 1:, :]
    tact_out, attn = mha(tactile_tokens, cls_tok, "t2i")
    tac_new = ln(tactile_tokens + tact_out, params["ln_tact_w"], params["ln_tact_b"])
    img_out, _ = mha(cls_tok, tac_new, "i2t")
    cls_new = ln(cls_tok + img_out, params["ln_img_w"], params["ln_img_b"])
    image_out = jnp.concatenate([cls_new, patch_tok], axis=1)
    return image_out, tac_new, attn


if __name__ == "__main__":
    def run_case(B, N, T, D, H, case_idx):
        key = jax.random.fold_in(jax.random.PRNGKey(0), case_idx)
        k_img, k_tac, k_par = jax.random.split(key, 3)
        image_tokens = jax.random.normal(k_img, (B, N, D), dtype=jnp.float32)
        tactile_tokens = jax.random.normal(k_tac, (B, T, D), dtype=jnp.float32)
        params = init_params(k_par, D)

        # Reference first: image_tokens is donated to the kernel call below.
        ref_img, ref_tac, ref_attn = reference_cls(
            image_tokens, tactile_tokens, params, H)
        jax.block_until_ready((ref_img, ref_tac, ref_attn))

        run = jax.jit(
            lambda img, tac, prm: cross_attention_block_cls(img, tac, prm, H),
            donate_argnums=(0,))
        img_out, tac_out, attn_w = run(image_tokens, tactile_tokens, params)
        jax.block_until_ready((img_out, tac_out, attn_w))

        # shape checks (match the PyTorch module outputs for 'cls')
        assert img_out.shape == (B, N, D)
        assert tac_out.shape == (B, T, D)
        assert attn_w.shape == (B, H, T, 1)   # average_attn_weights=False

        # bf16 matmul operands (f32 accumulation) -> loosened tolerance
        np.testing.assert_allclose(np.asarray(img_out), np.asarray(ref_img),
                                   atol=2e-2, rtol=2e-2)
        np.testing.assert_allclose(np.asarray(tac_out), np.asarray(ref_tac),
                                   atol=2e-2, rtol=2e-2)
        np.testing.assert_allclose(np.asarray(attn_w), np.asarray(ref_attn),
                                   atol=1e-6, rtol=1e-6)

    # toy config (D not a multiple of 128 -> un-fused projection path)
    run_case(B=2, N=17, T=8, D=32, H=4, case_idx=0)
    # lane-aligned config (D % 128 == 0 -> fused q/v and k/v projection path)
    run_case(B=2, N=5, T=8, D=128, H=8, case_idx=1)

    print("KERNEL_OK")
</pallas_src>

<mosaic_0001>
module attributes {stable_mosaic.version = 11 : i64} {
  func.func @kernel(%arg0: i32, %arg1: memref<2x32xf32, #tpu.memory_space<vmem>>, %arg2: memref<2x8x32xf32, #tpu.memory_space<vmem>>, %arg3: memref<32x192xbf16, #tpu.memory_space<vmem>>, %arg4: memref<10x32xf32, #tpu.memory_space<vmem>>, %arg5: memref<2x32xf32, #tpu.memory_space<vmem>>, %arg6: memref<2x8x32xf32, #tpu.memory_space<vmem>>) attributes {dimension_semantics = [#tpu.dimension_semantics<parallel>], iteration_bounds = array<i64: 1>, scalar_prefetch = 0 : i64, scratch_operands = 0 : i64, tpu.core_type = #tpu.core_type<tc>, window_params = [{transform_indices = @transform_0, window_bounds = array<i64: 2, 32>}, {transform_indices = @transform_1, window_bounds = array<i64: 2, 8, 32>}, {pipeline_mode = #tpu.pipeline_mode<synchronous>, transform_indices = @transform_2, window_bounds = array<i64: 32, 192>}, {pipeline_mode = #tpu.pipeline_mode<synchronous>, transform_indices = @transform_3, window_bounds = array<i64: 10, 32>}, {transform_indices = @transform_4, window_bounds = array<i64: 2, 32>}, {transform_indices = @transform_5, window_bounds = array<i64: 2, 8, 32>}]} {
    %c0 = arith.constant 0 : index
    %c0_0 = arith.constant 0 : index
    %0 = vector.load %arg1[%c0, %c0_0] : memref<2x32xf32, #tpu.memory_space<vmem>>, vector<2x32xf32>
    %c0_1 = arith.constant 0 : index
    %c0_2 = arith.constant 0 : index
    %c0_3 = arith.constant 0 : index
    %1 = vector.load %arg2[%c0_1, %c0_2, %c0_3] : memref<2x8x32xf32, #tpu.memory_space<vmem>>, vector<2x8x32xf32>
    %c0_4 = arith.constant 0 : index
    %c0_5 = arith.constant 0 : index
    %2 = vector.load %arg4[%c0_4, %c0_5] : memref<10x32xf32, #tpu.memory_space<vmem>>, vector<1x32xf32>
    %c1 = arith.constant 1 : index
    %c0_6 = arith.constant 0 : index
    %3 = vector.load %arg4[%c1, %c0_6] : memref<10x32xf32, #tpu.memory_space<vmem>>, vector<1x32xf32>
    %c2 = arith.constant 2 : index
    %c0_7 = arith.constant 0 : index
    %4 = vector.load %arg4[%c2, %c0_7] : memref<10x32xf32, #tpu.memory_space<vmem>>, vector<1x32xf32>
    %c3 = arith.constant 3 : index
    %c0_8 = arith.constant 0 : index
    %5 = vector.load %arg4[%c3, %c0_8] : memref<10x32xf32, #tpu.memory_space<vmem>>, vector<1x32xf32>
    %c4 = arith.constant 4 : index
    %c0_9 = arith.constant 0 : index
    %6 = vector.load %arg4[%c4, %c0_9] : memref<10x32xf32, #tpu.memory_space<vmem>>, vector<1x32xf32>
    %c5 = arith.constant 5 : index
    %c0_10 = arith.constant 0 : index
    %7 = vector.load %arg4[%c5, %c0_10] : memref<10x32xf32, #tpu.memory_space<vmem>>, vector<1x32xf32>
    %c6 = arith.constant 6 : index
    %c0_11 = arith.constant 0 : index
    %8 = vector.load %arg4[%c6, %c0_11] : memref<10x32xf32, #tpu.memory_space<vmem>>, vector<1x32xf32>
    %c7 = arith.constant 7 : index
    %c0_12 = arith.constant 0 : index
    %9 = vector.load %arg4[%c7, %c0_12] : memref<10x32xf32, #tpu.memory_space<vmem>>, vector<1x32xf32>
    %c8 = arith.constant 8 : index
    %c0_13 = arith.constant 0 : index
    %10 = vector.load %arg4[%c8, %c0_13] : memref<10x32xf32, #tpu.memory_space<vmem>>, vector<1x32xf32>
    %c9 = arith.constant 9 : index
    %c0_14 = arith.constant 0 : index
    %11 = vector.load %arg4[%c9, %c0_14] : memref<10x32xf32, #tpu.memory_space<vmem>>, vector<1x32xf32>
    %12 = tpu.iota {dimensions = array<i32: 0>} : vector<32x4xi32>
    %13 = tpu.iota {dimensions = array<i32: 1>} : vector<32x4xi32>
    %c8_i32 = arith.constant 8 : i32
    %14 = vector.broadcast %c8_i32 : i32 to vector<32x4xi32>
    %15 = arith.muli %13, %14 : vector<32x4xi32>
    %16 = arith.cmpi sge, %12, %15 : vector<32x4xi32>
    %c1_i32 = arith.constant 1 : i32
    %17 = vector.broadcast %c1_i32 : i32 to vector<32x4xi32>
    %18 = arith.addi %13, %17 : vector<32x4xi32>
    %c8_i32_15 = arith.constant 8 : i32
    %19 = vector.broadcast %c8_i32_15 : i32 to vector<32x4xi32>
    %20 = arith.muli %18, %19 : vector<32x4xi32>
    %21 = arith.cmpi slt, %12, %20 : vector<32x4xi32>
    %22 = arith.andi %16, %21 : vector<32x4xi1>
    %cst = arith.constant 1.000000e+00 : f32
    %cst_16 = arith.constant 0.000000e+00 : f32
    %23 = vector.broadcast %cst : f32 to vector<32x4xf32>
    %24 = vector.broadcast %cst_16 : f32 to vector<32x4xf32>
    %25 = arith.select %22, %23, %24 : vector<32x4xi1>, vector<32x4xf32>
    %26 = arith.truncf %25 : vector<32x4xf32> to vector<32x4xbf16>
    %27 = tpu.iota {dimensions = array<i32: 0>} : vector<4x32xi32>
    %28 = tpu.iota {dimensions = array<i32: 1>} : vector<4x32xi32>
    %c8_i32_17 = arith.constant 8 : i32
    %29 = vector.broadcast %c8_i32_17 : i32 to vector<4x32xi32>
    %30 = arith.muli %27, %29 : vector<4x32xi32>
    %31 = arith.cmpi sge, %28, %30 : vector<4x32xi32>
    %c1_i32_18 = arith.constant 1 : i32
    %32 = vector.broadcast %c1_i32_18 : i32 to vector<4x32xi32>
    %33 = arith.addi %27, %32 : vector<4x32xi32>
    %c8_i32_19 = arith.constant 8 : i32
    %34 = vector.broadcast %c8_i32_19 : i32 to vector<4x32xi32>
    %35 = arith.muli %33, %34 : vector<4x32xi32>
    %36 = arith.cmpi slt, %28, %35 : vector<4x32xi32>
    %37 = arith.andi %31, %36 : vector<4x32xi1>
    %cst_20 = arith.constant 1.000000e+00 : f32
    %cst_21 = arith.constant 0.000000e+00 : f32
    %38 = vector.broadcast %cst_20 : f32 to vector<4x32xf32>
    %39 = vector.broadcast %cst_21 : f32 to vector<4x32xf32>
    %40 = arith.select %37, %38, %39 : vector<4x32xi1>, vector<4x32xf32>
    %41 = arith.truncf %40 : vector<4x32xf32> to vector<4x32xbf16>
    %c0_22 = arith.constant 0 : index
    %c0_23 = arith.constant 0 : index
    %42 = vector.load %arg3[%c0_22, %c0_23] : memref<32x192xbf16, #tpu.memory_space<vmem>>, vector<32x32xbf16>
    %43 = arith.truncf %0 : vector<2x32xf32> to vector<2x32xbf16>
    %cst_24 = arith.constant dense<0.000000e+00> : vector<2x32xf32>
    %44 = tpu.matmul %43, %42, %cst_24 {dimension_numbers = #tpu.dot_dimension_numbers<[1], [0], [0], [1], [0, 0, 1, 1], [], []>} : vector<2x32xbf16>, vector<32x32xbf16>, vector<2x32xf32> -> vector<2x32xf32>
    %45 = vector.broadcast %2 : vector<1x32xf32> to vector<2x32xf32>
    %46 = arith.addf %44, %45 : vector<2x32xf32>
    %c0_25 = arith.constant 0 : index
    %c32 = arith.constant 32 : index
    %47 = vector.load %arg3[%c0_25, %c32] : memref<32x192xbf16, #tpu.memory_space<vmem>>, vector<32x32xbf16>
    %48 = arith.truncf %0 : vector<2x32xf32> to vector<2x32xbf16>
    %cst_26 = arith.constant dense<0.000000e+00> : vector<2x32xf32>
    %49 = tpu.matmul %48, %47, %cst_26 {dimension_numbers = #tpu.dot_dimension_numbers<[1], [0], [0], [1], [0, 0, 1, 1], [], []>} : vector<2x32xbf16>, vector<32x32xbf16>, vector<2x32xf32> -> vector<2x32xf32>
    %50 = vector.broadcast %6 : vector<1x32xf32> to vector<2x32xf32>
    %51 = arith.addf %49, %50 : vector<2x32xf32>
    %c0_27 = arith.constant 0 : index
    %c160 = arith.constant 160 : index
    %52 = vector.load %arg3[%c0_27, %c160] : memref<32x192xbf16, #tpu.memory_space<vmem>>, vector<32x32xbf16>
    %53 = arith.truncf %51 : vector<2x32xf32> to vector<2x32xbf16>
    %cst_28 = arith.constant dense<0.000000e+00> : vector<2x32xf32>
    %54 = tpu.matmul %53, %52, %cst_28 {dimension_numbers = #tpu.dot_dimension_numbers<[1], [0], [0], [1], [0, 0, 1, 1], [], []>} : vector<2x32xbf16>, vector<32x32xbf16>, vector<2x32xf32> -> vector<2x32xf32>
    %55 = vector.broadcast %7 : vector<1x32xf32> to vector<2x32xf32>
    %56 = arith.addf %54, %55 : vector<2x32xf32>
    %57 = vector.shape_cast %56 : vector<2x32xf32> to vector<2x1x32xf32>
    %58 = vector.broadcast %57 : vector<2x1x32xf32> to vector<2x8x32xf32>
    %59 = arith.addf %1, %58 : vector<2x8x32xf32>
    %cst_29 = arith.constant dense<0.000000e+00> : vector<2x8xf32>
    %60 = vector.multi_reduction <add>, %59, %cst_29 [2] : vector<2x8x32xf32> to vector<2x8xf32>
    %61 = vector.shape_cast %60 : vector<2x8xf32> to vector<2x8x1xf32>
    %cst_30 = arith.constant 3.200000e+01 : f32
    %62 = vector.broadcast %cst_30 : f32 to vector<2x8x1xf32>
    %63 = arith.divf %61, %62 : vector<2x8x1xf32>
    %64 = vector.broadcast %63 : vector<2x8x1xf32> to vector<2x8x32xf32>
    %65 = arith.subf %59, %64 : vector<2x8x32xf32>
    %66 = arith.mulf %65, %65 : vector<2x8x32xf32>
    %cst_31 = arith.constant dense<0.000000e+00> : vector<2x8xf32>
    %67 = vector.multi_reduction <add>, %66, %cst_31 [2] : vector<2x8x32xf32> to vector<2x8xf32>
    %68 = vector.shape_cast %67 : vector<2x8xf32> to vector<2x8x1xf32>
    %cst_32 = arith.constant 3.200000e+01 : f32
    %69 = vector.broadcast %cst_32 : f32 to vector<2x8x1xf32>
    %70 = arith.divf %68, %69 : vector<2x8x1xf32>
    %cst_33 = arith.constant 9.99999974E-6 : f32
    %71 = vector.broadcast %cst_33 : f32 to vector<2x8x1xf32>
    %72 = arith.addf %70, %71 : vector<2x8x1xf32>
    %73 = math.rsqrt %72 : vector<2x8x1xf32>
    %74 = vector.broadcast %73 : vector<2x8x1xf32> to vector<2x8x32xf32>
    %75 = arith.mulf %65, %74 : vector<2x8x32xf32>
    %76 = vector.shape_cast %8 : vector<1x32xf32> to vector<1x1x32xf32>
    %77 = vector.broadcast %76 : vector<1x1x32xf32> to vector<2x8x32xf32>
    %78 = arith.mulf %75, %77 : vector<2x8x32xf32>
    %79 = vector.shape_cast %9 : vector<1x32xf32> to vector<1x1x32xf32>
    %80 = vector.broadcast %79 : vector<1x1x32xf32> to vector<2x8x32xf32>
    %81 = arith.addf %78, %80 : vector<2x8x32xf32>
    %c0_34 = arith.constant 0 : index
    %c0_35 = arith.constant 0 : index
    %c0_36 = arith.constant 0 : index
    %82 = vector.load %arg6[%c0_34, %c0_35, %c0_36] : memref<2x8x32xf32, #tpu.memory_space<vmem>>, vector<2x8x32xf32>
    tpu.vector_store %arg6[%c0_34, %c0_35, %c0_36], %81 {strides = array<i32>} : memref<2x8x32xf32, #tpu.memory_space<vmem>>, vector<2x8x32xf32>,
    %83 = vector.shape_cast %81 : vector<2x8x32xf32> to vector<16x32xf32>
    %c0_37 = arith.constant 0 : index
    %c64 = arith.constant 64 : index
    %84 = vector.load %arg3[%c0_37, %c64] : memref<32x192xbf16, #tpu.memory_space<vmem>>, vector<32x32xbf16>
    %85 = arith.truncf %83 : vector<16x32xf32> to vector<16x32xbf16>
    %cst_38 = arith.constant dense<0.000000e+00> : vector<16x32xf32>
    %86 = tpu.matmul %85, %84, %cst_38 {dimension_numbers = #tpu.dot_dimension_numbers<[1], [0], [0], [1], [0, 0, 1, 1], [], []>} : vector<16x32xbf16>, vector<32x32xbf16>, vector<16x32xf32> -> vector<16x32xf32>
    %87 = vector.broadcast %3 : vector<1x32xf32> to vector<16x32xf32>
    %88 = arith.addf %86, %87 : vector<16x32xf32>
    %c0_39 = arith.constant 0 : index
    %c96 = arith.constant 96 : index
    %89 = vector.load %arg3[%c0_39, %c96] : memref<32x192xbf16, #tpu.memory_space<vmem>>, vector<32x32xbf16>
    %90 = arith.truncf %83 : vector<16x32xf32> to vector<16x32xbf16>
    %cst_40 = arith.constant dense<0.000000e+00> : vector<16x32xf32>
    %91 = tpu.matmul %90, %89, %cst_40 {dimension_numbers = #tpu.dot_dimension_numbers<[1], [0], [0], [1], [0, 0, 1, 1], [], []>} : vector<16x32xbf16>, vector<32x32xbf16>, vector<16x32xf32> -> vector<16x32xf32>
    %92 = vector.broadcast %4 : vector<1x32xf32> to vector<16x32xf32>
    %93 = arith.addf %91, %92 : vector<16x32xf32>
    %94 = vector.shape_cast %46 : vector<2x32xf32> to vector<2x1x32xf32>
    %95 = vector.shape_cast %88 : vector<16x32xf32> to vector<2x8x32xf32>
    %96 = vector.broadcast %94 : vector<2x1x32xf32> to vector<2x8x32xf32>
    %97 = arith.mulf %96, %95 : vector<2x8x32xf32>
    %98 = vector.shape_cast %97 : vector<2x8x32xf32> to vector<16x32xf32>
    %99 = arith.truncf %98 : vector<16x32xf32> to vector<16x32xbf16>
    %cst_41 = arith.constant dense<0.000000e+00> : vector<16x4xf32>
    %100 = tpu.matmul %99, %26, %cst_41 {dimension_numbers = #tpu.dot_dimension_numbers<[1], [0], [0], [1], [0, 0, 1, 1], [], []>} : vector<16x32xbf16>, vector<32x4xbf16>, vector<16x4xf32> -> vector<16x4xf32>
    %101 = vector.shape_cast %100 : vector<16x4xf32> to vector<2x8x4xf32>
    %cst_42 = arith.constant dense<0xFF800000> : vector<2x4xf32>
    %102 = vector.multi_reduction <maximumf>, %101, %cst_42 [1] : vector<2x8x4xf32> to vector<2x4xf32>
    %103 = vector.shape_cast %102 : vector<2x4xf32> to vector<2x1x4xf32>
    %104 = vector.broadcast %103 : vector<2x1x4xf32> to vector<2x8x4xf32>
    %105 = arith.subf %101, %104 : vector<2x8x4xf32>
    %106 = math.exp %105 : vector<2x8x4xf32>
    %cst_43 = arith.constant dense<0.000000e+00> : vector<2x4xf32>
    %107 = vector.multi_reduction <add>, %106, %cst_43 [1] : vector<2x8x4xf32> to vector<2x4xf32>
    %108 = vector.shape_cast %107 : vector<2x4xf32> to vector<2x1x4xf32>
    %109 = tpu.reciprocal %108 {approx = true} : vector<2x1x4xf32> -> vector<2x1x4xf32>
    %110 = vector.broadcast %109 : vector<2x1x4xf32> to vector<2x8x4xf32>
    %111 = arith.mulf %106, %110 : vector<2x8x4xf32>
    %112 = vector.shape_cast %111 : vector<2x8x4xf32> to vector<16x4xf32>
    %113 = arith.truncf %112 : vector<16x4xf32> to vector<16x4xbf16>
    %cst_44 = arith.constant dense<0.000000e+00> : vector<16x32xf32>
    %114 = tpu.matmul %113, %41, %cst_44 {dimension_numbers = #tpu.dot_dimension_numbers<[1], [0], [0], [1], [0, 0, 1, 1], [], []>} : vector<16x4xbf16>, vector<4x32xbf16>, vector<16x32xf32> -> vector<16x32xf32>
    %115 = vector.shape_cast %114 : vector<16x32xf32> to vector<2x8x32xf32>
    %116 = vector.shape_cast %93 : vector<16x32xf32> to vector<2x8x32xf32>
    %117 = arith.mulf %115, %116 : vector<2x8x32xf32>
    %cst_45 = arith.constant dense<0.000000e+00> : vector<2x32xf32>
    %118 = vector.multi_reduction <add>, %117, %cst_45 [1] : vector<2x8x32xf32> to vector<2x32xf32>
    %c0_46 = arith.constant 0 : index
    %c128 = arith.constant 128 : index
    %119 = vector.load %arg3[%c0_46, %c128] : memref<32x192xbf16, #tpu.memory_space<vmem>>, vector<32x32xbf16>
    %120 = arith.truncf %118 : vector<2x32xf32> to vector<2x32xbf16>
    %cst_47 = arith.constant dense<0.000000e+00> : vector<2x32xf32>
    %121 = tpu.matmul %120, %119, %cst_47 {dimension_numbers = #tpu.dot_dimension_numbers<[1], [0], [0], [1], [0, 0, 1, 1], [], []>} : vector<2x32xbf16>, vector<32x32xbf16>, vector<2x32xf32> -> vector<2x32xf32>
    %122 = vector.broadcast %5 : vector<1x32xf32> to vector<2x32xf32>
    %123 = arith.addf %121, %122 : vector<2x32xf32>
    %124 = arith.addf %0, %123 : vector<2x32xf32>
    %cst_48 = arith.constant dense<0.000000e+00> : vector<2xf32>
    %125 = vector.multi_reduction <add>, %124, %cst_48 [1] : vector<2x32xf32> to vector<2xf32>
    %126 = vector.shape_cast %125 : vector<2xf32> to vector<2x1xf32>
    %cst_49 = arith.constant 3.200000e+01 : f32
    %127 = vector.broadcast %cst_49 : f32 to vector<2x1xf32>
    %128 = arith.divf %126, %127 : vector<2x1xf32>
    %129 = vector.broadcast %128 : vector<2x1xf32> to vector<2x32xf32>
    %130 = arith.subf %124, %129 : vector<2x32xf32>
    %131 = arith.mulf %130, %130 : vector<2x32xf32>
    %cst_50 = arith.constant dense<0.000000e+00> : vector<2xf32>
    %132 = vector.multi_reduction <add>, %131, %cst_50 [1] : vector<2x32xf32> to vector<2xf32>
    %133 = vector.shape_cast %132 : vector<2xf32> to vector<2x1xf32>
    %cst_51 = arith.constant 3.200000e+01 : f32
    %134 = vector.broadcast %cst_51 : f32 to vector<2x1xf32>
    %135 = arith.divf %133, %134 : vector<2x1xf32>
    %cst_52 = arith.constant 9.99999974E-6 : f32
    %136 = vector.broadcast %cst_52 : f32 to vector<2x1xf32>
    %137 = arith.addf %135, %136 : vector<2x1xf32>
    %138 = math.rsqrt %137 : vector<2x1xf32>
    %139 = vector.broadcast %138 : vector<2x1xf32> to vector<2x32xf32>
    %140 = arith.mulf %130, %139 : vector<2x32xf32>
    %141 = vector.broadcast %10 : vector<1x32xf32> to vector<2x32xf32>
    %142 = arith.mulf %140, %141 : vector<2x32xf32>
    %143 = vector.broadcast %11 : vector<1x32xf32> to vector<2x32xf32>
    %144 = arith.addf %142, %143 : vector<2x32xf32>
    %c0_53 = arith.constant 0 : index
    %c0_54 = arith.constant 0 : index
    %145 = vector.load %arg5[%c0_53, %c0_54] : memref<2x32xf32, #tpu.memory_space<vmem>>, vector<2x32xf32>
    tpu.vector_store %arg5[%c0_53, %c0_54], %144 {strides = array<i32>} : memref<2x32xf32, #tpu.memory_space<vmem>>, vector<2x32xf32>,
    return
  }
  func.func @transform_0(%arg0: i32) -> (i32, i32) {
    %c0_i32 = arith.constant 0 : i32
    %c0_i32_0 = arith.constant 0 : i32
    return %arg0, %c0_i32 : i32, i32
  }
  func.func @transform_1(%arg0: i32) -> (i32, i32, i32) {
    %c0_i32 = arith.constant 0 : i32
    %c0_i32_0 = arith.constant 0 : i32
    %c0_i32_1 = arith.constant 0 : i32
    return %arg0, %c0_i32, %c0_i32_0 : i32, i32, i32
  }
  func.func @transform_2(%arg0: i32) -> (i32, i32) {
    %c0_i32 = arith.constant 0 : i32
    %c0_i32_0 = arith.constant 0 : i32
    %c0_i32_1 = arith.constant 0 : i32
    return %c0_i32, %c0_i32_0 : i32, i32
  }
  func.func @transform_3(%arg0: i32) -> (i32, i32) {
    %c0_i32 = arith.constant 0 : i32
    %c0_i32_0 = arith.constant 0 : i32
    %c0_i32_1 = arith.constant 0 : i32
    return %c0_i32, %c0_i32_0 : i32, i32
  }
  func.func @transform_4(%arg0: i32) -> (i32, i32) {
    %c0_i32 = arith.constant 0 : i32
    %c0_i32_0 = arith.constant 0 : i32
    return %arg0, %c0_i32 : i32, i32
  }
  func.func @transform_5(%arg0: i32) -> (i32, i32, i32) {
    %c0_i32 = arith.constant 0 : i32
    %c0_i32_0 = arith.constant 0 : i32
    %c0_i32_1 = arith.constant 0 : i32
    return %arg0, %c0_i32, %c0_i32_0 : i32, i32, i32
  }
}

</mosaic_0001>

<bundles_post_ra>
// kernel: _lambda_.2
= control target key start
LH: loop header
LB: loop body
LE: loop exit
PB: predicated region body
PF: predicated region fallthrough
CT: control target
= control target key end

     0   :  { %12 = vsyncpa [#allocation3], 0  ;;  %s640_s28 = smov 96   ;;  %s817_s0 = inlined_call_operand.hbm [shape: f32[2,17,32], index: 0, kind: input, shape index: {}, may-alias: {0,5}]   ;;  %s818_s1 = inlined_call_operand.vmem [shape: f32[2,32], index: 1, kind: input, shape index: {}]   ;;  %s819_s2 = inlined_call_operand.vmem [shape: f32[2,8,32], index: 2, kind: input, shape index: {}]   ;;  %s820_s3 = inlined_call_operand.vmem [shape: bf16[32,192], index: 3, kind: input, shape index: {}]   ;;  %s821_s4 = inlined_call_operand.vmem [shape: f32[10,32], index: 4, kind: input, shape index: {}]   ;;  %s822_s5 = inlined_call_operand.hbm [shape: f32[2,17,32], index: 5, kind: output, shape index: {0}, may-alias: {0,5}]   ;;  %s823_s6 = inlined_call_operand.hbm [shape: f32[2,8,32], index: 6, kind: output, shape index: {1}]  }
   0x1   :  { %v506_v0 = vld [vmem:[%s820_s3 + $0x10] sm:$0xf]  ;;  %v545_v1 = vld [vmem:[%s820_s3 + $0x14] sm:$0xf0]  ;;  %v502_v3 = vld [vmem:[%s820_s3] sm:$0xf] }
   0x2   :  { %v507_v2 = vor.u32 %v545_v1, %v506_v0  ;;  %v544_v4 = vld [vmem:[%s820_s3 + $0x4] sm:$0xf0] }
   0x3   :  { %v503_v5 = vor.u32 %v544_v4, %v502_v3 }
   0x4   :  { %110 = vrot.lane.b32.xlu0 %v507_v2, %s640_s28  ;;  %100 = vmatpush.bf16.msra.mxu0 %v507_v2 }
   0x5   :  { %13 = vsyncpa [#allocation5], 0  ;;  %v700_v6 = vld [vmem:[%s818_s1] sm:$0x3]  ;;  %vm90_vm0 = vcmask 261120   ;;  %v25_v33 = vld [vmem:[%s819_s2 + $0x8] sm:$0xff] }
   0x6   :  { %v76_v7 = vpack.c.bf16 %v700_v6, %v700_v6  ;;  %v516_v8 = vld [vmem:[%s820_s3 + $0x14] sm:$0xf]  ;;  %v547_v9 = vld [vmem:[%s820_s3 + $0x18] sm:$0xf0]  ;;  %v512_v11 = vld [vmem:[%s820_s3 + $0x4] sm:$0xf] }
   0x7   :  { %v517_v10 = vor.u32 %v547_v9, %v516_v8  ;;  %v546_v12 = vld [vmem:[%s820_s3 + $0x8] sm:$0xf0]  ;;  %v562_v18 = vld [vmem:[%s821_s4 + $0x4] ss:$0 sm:$0xff]  ;;  %v563_v23 = vld [vmem:[%s821_s4 + $0x5] ss:$0 sm:$0xff] }
   0x8   :  { %101 = vmatpush.bf16.msra.mxu0 %v503_v5  ;;  %v513_v13 = vor.u32 %v546_v12, %v512_v11  ;;  %v24_v26 = vld [vmem:[%s819_s2] sm:$0xff]  ;;  %v641_v36 = vmov 32.0   ;;  %v525_v39 = vld [vmem:[%s820_s3 + $0x10] sm:$0xf]  ;;  %v549_v40 = vld [vmem:[%s820_s3 + $0x14] sm:$0xf0] }
   0x9   :  { %145 = vrot.lane.b32.xlu1 %v517_v10, %s640_s28  ;;  %572 = vrcp.f32 %v641_v36  ;;  %v526_v41 = vor.u32 %v549_v40, %v525_v39  ;;  %s642_s25 = smov 64   ;;  %v521_v43 = vld [vmem:[%s820_s3] sm:$0xf]  ;;  %v548_v44 = vld [vmem:[%s820_s3 + $0x4] sm:$0xf0]  ;;  %s643_s29 = smov 32  }
   0xa   :  { %v522_v46 = vor.u32 %v548_v44, %v521_v43  ;;  %v644_v40 = vmov 1.0|1.0   ;;  %s646_s23 = smov [#allocation4]   ;;  %s483_s26 = sshll.u32 %s823_s6, 4  ;;  %s484_s26 = int_to_ptr.hbm [resolvable:$true] %s483_s26 }
   0xb   :  { %508 = vmatmul.msk.bf16.vlgmr.msra.gmra.mxu0 %vm90_vm0, %v76_v7  ;;  %s481_s24 = sshll.u32 %s646_s23, 4  ;;  %s647_s27 = smov 128   ;;  %s482_s24 = int_to_ptr.vmem [resolvable:$true] %s481_s24 }
   0xc   :  { %108 = vrot.lane.b32.xlu0 %v503_v5, %s640_s28  ;;  %s649_s8 = smov [#allocation2]   ;;  %s473_s12 = sshll.u32 %s822_s5, 4  ;;  %s474_s12 = int_to_ptr.hbm [resolvable:$true] %s473_s12 }
   0xd   :  { %s471_s9 = sshll.u32 %s649_s8, 4  ;;  %s472_s9 = int_to_ptr.vmem [resolvable:$true] %s471_s9 }
   0xf   :  { %v573_v37 = vpop.eup %572 }
  0x10   :  { %v180_v38 = vmul.f32 32.0, %v573_v37  ;;  %vm184_vm1 = vweird.f32 %v573_v37 }
  0x11   :  { %143 = vrot.lane.b32.xlu1 %v513_v13, %s640_s28  ;;  %s648_s28 = smov 8  }
  0x12   :  { %v181_v42 = vsub.f32 1.0, %v180_v38 }
  0x14   :  { %v182_v45 = vmul.f32 %v573_v37, %v181_v42 }
  0x16   :  { %v183_v47 = vadd.f32 %v573_v37, %v182_v45  ;;  %v568_v45 = vld [vmem:[%s821_s4 + $0x1] ss:$0 sm:$0xff] }
  0x18   :  { %v745_v48 = vsel %vm184_vm1, %v573_v37, %v183_v47 }
  0x76   :  { %v111_v14 = vpop.permute.xlu0 %110 }
  0x77   :  { %120 = vmatpush.bf16.msra.mxu1 %v111_v14 }
  0x7b   :  { %v146_v16 = vpop.permute.xlu1 %145 }
  0x7c   :  { %158 = vmatpush.bf16.msra.mxu2 %v146_v16  ;;  %v564_v16 = vld [vmem:[%s821_s4 + $0x6] ss:$0 sm:$0xff] }
  0x7e   :  { %v109_v15 = vpop.permute.xlu0 %108 }
  0x7f   :  { %121 = vmatpush.bf16.msra.mxu1 %v109_v15 }
  0x82   :  { %509 = vmatmul.msk.bf16.vlgmr.msra.gmra.mxu1 %vm90_vm0, %v76_v7 }
  0x83   :  { %v144_v17 = vpop.permute.xlu1 %143 }
  0x84   :  { %159 = vmatpush.bf16.msra.mxu2 %v144_v17 }
  0x88   :  { %v752_v2 = vpop.f32.mrf.mxu0 }
  0x90   :  { %v105_v10 = vpop.f32.mrf.mxu0 }
  0xff   :  { %v123_v19 = vpop.f32.mrf.mxu1 }
 0x100   :  { %v124_v20 = vadd.f32 %v562_v18, %v123_v19 }
 0x102   :  { %v131_v21 = vpack.c.bf16 %v124_v20, %v124_v20  ;;  %v565_v20 = vld [vmem:[%s821_s4 + $0x7] ss:$0 sm:$0xff] }
 0x104   :  { %518 = vmatmul.msk.bf16.vlgmr.msra.gmra.mxu2 %vm90_vm0, %v131_v21 }
 0x107   :  { %v125_v22 = vpop.f32.mrf.mxu1 }
 0x187   :  { %v161_v24 = vpop.f32.mrf.mxu2 }
 0x188   :  { %v162_v25 = vadd.f32 %v563_v23, %v161_v24 }
 0x18a   :  { %v166_v27 = vrot.slane %v162_v25, 1  ;;  %v167_v28 = vperm.slane %v162_v25, 0 }
 0x18c   :  { %v171_v29 = vadd.f32 %v167_v28, %v24_v26  ;;  %v168_v30 = vperm.slane %v166_v27, 0 }
 0x18e   :  { %v173_v31 = vsel %vm90_vm0, %v171_v29, 0.0  ;;  %v172_v34 = vadd.f32 %v168_v30, %v25_v33 }
 0x18f   :  { %v163_v32 = vpop.f32.mrf.mxu2  ;;  %174 = vadd.xlane.f32.xlu2 %v173_v31  ;;  %v36_v31 = vlaneseq }
 0x190   :  { %v176_v35 = vsel %vm90_vm0, %v172_v34, 0.0 }
 0x191   :  { %v37_v32 = vshrl.u32 %v36_v31, 7  ;;  %v42_v33 = vand.u32 127, %v36_v31 }
 0x193   :  { %v43_v36 = vmul.u32 8, %v42_v33  ;;  %v48_v37 = vadd.s32 1, %v42_v33  ;;  %v38_v39 = vadd.s32 8, %v37_v32 }
 0x195   :  { %v49_v38 = vmul.u32 8, %v48_v37  ;;  %vm44_vm13 = vcmp.ge.s32.totalorder %v37_v32, %v43_v36  ;;  %vm45_vm1 = vcmp.ge.s32.totalorder %v38_v39, %v43_v36 }
 0x197   :  { %177 = vadd.xlane.f32.xlu2 %v176_v35  ;;  %v40_v35 = vadd.s32 24, %v37_v32  ;;  %vm50_vm14 = vcmp.lt.s32.totalorder %v37_v32, %v49_v38 }
 0x199   :  { %vm47_vm9 = vcmp.ge.s32.totalorder %v40_v35, %v43_v36  ;;  %vm53_vm11 = vcmp.lt.s32.totalorder %v40_v35, %v49_v38 }
 0x19a   :  { %vm57_vm15 = vmand %vm47_vm9, %vm53_vm11  ;;  %vm361_vm11 = vcmask 1041408  }
 0x1af   :  { %250 = vrot.lane.b32.xlu2 %v526_v41, %s642_s25 }
 0x1b7   :  { %248 = vrot.lane.b32.xlu2 %v522_v46, %s642_s25 }
 0x1bf   :  { %274 = vrot.lane.b32.xlu2 %v526_v41, %s643_s29  ;;  %v566_v41 = vld [vmem:[%s821_s4] ss:$0 sm:$0xff] }
 0x1c0   :  { %v104_v43 = vadd.f32 %v566_v41, %v752_v2  ;;  %v551_v41 = vld [vmem:[%s820_s3 + $0x18] sm:$0xf0] }
 0x1c2   :  { %v293_v44 = vrot.slane %v104_v43, 1 }
 0x1c4   :  { %v295_v47 = vperm.slane %v293_v44, 0  ;;  %v550_v44 = vld [vmem:[%s820_s3 + $0x8] sm:$0xf0] }
 0x1c7   :  { %272 = vrot.lane.b32.xlu2 %v522_v46, %s643_s29  ;;  %v294_v46 = vperm.slane %v104_v43, 0  ;;  %v537_v43 = vld [vmem:[%s820_s3 + $0x4] sm:$0xf] }
 0x202   :  { %v175_v49 = vpop.xlane.xlu2 %174 }
 0x203   :  { %v186_v50 = vmul.f32 %v745_v48, %v175_v49 }
 0x205   :  { %v188_v51 = vsub.f32 %v171_v29, %v186_v50 }
 0x207   :  { %v190_v52 = vmul.f32 %v188_v51, %v188_v51 }
 0x209   :  { %v192_v53 = vsel %vm90_vm0, %v190_v52, 0.0 }
 0x20a   :  { %193 = vadd.xlane.f32.xlu0 %v192_v53  ;;  %v178_v54 = vpop.xlane.xlu2 %177 }
 0x20b   :  { %v187_v55 = vmul.f32 %v745_v48, %v178_v54 }
 0x20d   :  { %v189_v56 = vsub.f32 %v172_v34, %v187_v55  ;;  %v39_v34 = vadd.s32 16, %v37_v32 }
 0x20f   :  { %v191_v57 = vmul.f32 %v189_v56, %v189_v56  ;;  %vm46_vm8 = vcmp.ge.s32.totalorder %v39_v34, %v43_v36  ;;  %vm52_vm10 = vcmp.lt.s32.totalorder %v39_v34, %v49_v38 }
 0x210   :  { %vm56_vm12 = vmand %vm46_vm8, %vm52_vm10 }
 0x211   :  { %v195_v58 = vsel %vm90_vm0, %v191_v57, 0.0 }
 0x212   :  { %196 = vadd.xlane.f32.xlu1 %v195_v58  ;;  %v251_v59 = vpop.permute.xlu2 %250 }
 0x213   :  { %263 = vmatpush.bf16.msra.mxu3 %v251_v59 }
 0x21a   :  { %v249_v60 = vpop.permute.xlu2 %248 }
 0x21b   :  { %264 = vmatpush.bf16.msra.mxu3 %v249_v60 }
 0x222   :  { %v275_v61 = vpop.permute.xlu2 %274 }
 0x223   :  { %284 = vmatpush.bf16.msrb.mxu0 %v275_v61 }
 0x22a   :  { %v273_v1 = vpop.permute.xlu2 %272 }
 0x22b   :  { %285 = vmatpush.bf16.msrb.mxu0 %v273_v1 }
 0x27d   :  { %v194_v62 = vpop.xlane.xlu0 %193 }
 0x27e   :  { %v198_v63 = vmul.f32 %v194_v62, %v745_v48 }
 0x280   :  { %v200_v0 = vadd.f32 1e-05, %v198_v63 }
 0x282   :  { %574 = vrsqrt.f32 %v200_v0  ;;  %vm208_vm3 = vweird.f32 %v200_v0 }
 0x285   :  { %v197_v3 = vpop.xlane.xlu1 %196 }
 0x286   :  { %v199_v4 = vmul.f32 %v197_v3, %v745_v48  ;;  %v66_v3 = vadd.s32 1, %v37_v32 }
 0x288   :  { %v575_v5 = vpop.eup %574  ;;  %v201_v7 = vadd.f32 1e-05, %v199_v4 }
 0x289   :  { %v203_v8 = vmul.f32 %v575_v5, %v200_v0  ;;  %vm209_vm2 = vweird.f32 %v575_v5 }
 0x28a   :  { %576 = vrsqrt.f32 %v201_v7  ;;  %vm210_vm4 = vmor %vm208_vm3, %vm209_vm2  ;;  %vm218_vm6 = vweird.f32 %v201_v7  ;;  %vm51_vm2 = vcmp.lt.s32.totalorder %v38_v39, %v49_v38 }
 0x28b   :  { %v204_v9 = vmul.f32 %v575_v5, %v203_v8  ;;  %vm529_vm3 = vmpackc.low %vm57_vm15, %vm56_vm12  ;;  %v67_v8 = vmul.u32 8, %v66_v3  ;;  %vm406_vm12 = vcmask 1041409  }
 0x28c   :  { %530 = vmatpush.bf16.msk.msrb.mxu1 %vm529_vm3, %v644_v40 }
 0x28d   :  { %v205_v11 = vmul.f32 0.5, %v204_v9  ;;  %vm68_vm9 = vcmp.lt.s32.totalorder %v42_v33, %v67_v8 }
 0x28f   :  { %v206_v12 = vsub.f32 1.5, %v205_v11 }
 0x290   :  { %v577_v13 = vpop.eup %576 }
 0x291   :  { %v207_v14 = vmul.f32 %v575_v5, %v206_v12  ;;  %v213_v15 = vmul.f32 %v577_v13, %v201_v7  ;;  %vm219_vm5 = vweird.f32 %v577_v13  ;;  %v64_v7 = vmul.u32 8, %v37_v32 }
 0x292   :  { %vm220_vm7 = vmor %vm218_vm6, %vm219_vm5  ;;  %v645_v12 = vmov 0.0  }
 0x293   :  { %v211_v17 = vsel %vm210_vm4, %v575_v5, %v207_v14  ;;  %v214_v18 = vmul.f32 %v577_v13, %v213_v15  ;;  %vm54_vm4 = vmand %vm44_vm13, %vm50_vm14  ;;  %vm65_vm8 = vcmp.ge.s32.totalorder %v42_v33, %v64_v7  ;;  %vm438_vm13 = vcmask 254976  }
 0x294   :  { %v222_v19 = vmul.f32 %v211_v17, %v188_v51  ;;  %vm55_vm5 = vmand %vm45_vm1, %vm51_vm2 }
 0x295   :  { %v215_v21 = vmul.f32 0.5, %v214_v18  ;;  %vm531_vm6 = vmpackc.low %vm55_vm5, %vm54_vm4 }
 0x296   :  { %v225_v22 = vmul.f32 %v564_v16, %v222_v19  ;;  %532 = vmatpush.bf16.msk.msrb.mxu1 %vm531_vm6, %v644_v40  ;;  %vm69_vm10 = vmand %vm65_vm8, %vm68_vm9  ;;  %v541_v40 = vld [vmem:[%s820_s3 + $0x14] sm:$0xf] }
 0x297   :  { %v216_v23 = vsub.f32 1.5, %v215_v21 }
 0x298   :  { %v228_v24 = vadd.f32 %v565_v20, %v225_v22 }
 0x299   :  { %v217_v25 = vmul.f32 %v577_v13, %v216_v23 }
 0x29a   :  { %230 = vst.msk [vmem:[#allocation4] sm:$0xff] %vm90_vm0, %v228_v24 }
 0x29b   :  { %v221_v26 = vsel %vm220_vm7, %v577_v13, %v217_v25  ;;  %vm318_vm7 = vcmask 31744   ;;  %v70_v13 = vsel %vm69_vm10, 1.0, %v645_v12 }
 0x29c   :  { %v223_v27 = vmul.f32 %v221_v26, %v189_v56  ;;  %v71_v14 = vpack.c.bf16 %v70_v13, %v70_v13  ;;  %v569_v13 = vld [vmem:[%s821_s4 + $0x3] ss:$0 sm:$0xff] }
 0x29e   :  { %v226_v28 = vmul.f32 %v564_v16, %v223_v27  ;;  %v363_v16 = vsel %vm361_vm11, %v71_v14, 0 }
 0x29f   :  { %372 = vmatpush.bf16.msrb.mxu2 %v363_v16 }
 0x2a0   :  { %v229_v29 = vadd.f32 %v565_v20, %v226_v28 }
 0x2a2   :  { %231 = vst.msk [vmem:[#allocation4 + $0x8] sm:$0xff] %vm90_vm0, %v229_v29  ;;  %v236_v30 = vpack.c.bf16 %v229_v29, %v228_v24 }
 0x2a3   :  { %489 = dma.vmem_to_hbm [thread:$0]  %s482_s24, 256, %s484_s26, [#allocation5], %s647_s27, %s647_s27, %s648_s28  }
 0x2a4   :  { %527 = vmatmul.msk.bf16.vlgmr.msra.gmra.mxu3 %vm90_vm0, %v236_v30  ;;  %528 = vmatmul.msk.bf16.vlgmr.msrb.gmra.mxu0 %vm90_vm0, %v236_v30 }
 0x327   :  { %v266_v42 = vpop.f32.mrf.mxu3 }
 0x328   :  { %v267_v49 = vadd.f32 %v568_v45, %v266_v42  ;;  %v542_v42 = vor.u32 %v551_v41, %v541_v40 }
 0x32a   :  { %v298_v52 = vmul.f32 %v294_v46, %v267_v49  ;;  %430 = vmatpush.bf16.msrb.mxu3 %v542_v42  ;;  %v538_v46 = vor.u32 %v550_v44, %v537_v43 }
 0x32e   :  { %431 = vmatpush.bf16.msrb.mxu3 %v538_v46 }
 0x32f   :  { %v268_v50 = vpop.f32.mrf.mxu3 }
 0x330   :  { %v269_v51 = vadd.f32 %v568_v45, %v268_v50  ;;  %v287_v45 = vpop.f32.mrf.mxu0 }
 0x332   :  { %v299_v53 = vmul.f32 %v295_v47, %v269_v51  ;;  %v567_v47 = vld [vmem:[%s821_s4 + $0x2] ss:$0 sm:$0xff] }
 0x333   :  { %v288_v49 = vadd.f32 %v567_v47, %v287_v45 }
 0x334   :  { %v300_v54 = vpack.c.bf16 %v299_v53, %v298_v52 }
 0x336   :  { %533 = vmatmul.msk.bf16.vlgmr.msrb.gmra.mxu1 %vm90_vm0, %v300_v54 }
 0x338   :  { %v289_v53 = vpop.f32.mrf.mxu0 }
 0x3b3   :  { %v313_v55 = vpop.f32.mrf.mxu1 }
 0x3b4   :  { %v319_v56 = vsel %vm318_vm7, %v313_v55, -inf }
 0x3b5   :  { %v320_v57 = vrot.slane %v319_v56, 4 }
 0x3b7   :  { %v321_v58 = vmax.f32 %v319_v56, %v320_v57  ;;  %v290_v56 = vadd.f32 %v567_v47, %v289_v53 }
 0x3b9   :  { %v322_v59 = vrot.slane %v321_v58, 2 }
 0x3bb   :  { %v323_v60 = vmax.f32 %v321_v58, %v322_v59  ;;  %v315_v61 = vpop.f32.mrf.mxu1 }
 0x3bc   :  { %v326_v62 = vsel %vm318_vm7, %v315_v61, -inf }
 0x3bd   :  { %v324_v63 = vrot.slane %v323_v60, 1  ;;  %v327_v0 = vrot.slane %v326_v62, 4 }
 0x3bf   :  { %v325_v1 = vmax.f32 %v323_v60, %v324_v63  ;;  %v328_v2 = vmax.f32 %v326_v62, %v327_v0 }
 0x3c1   :  { %v333_v4 = vsub.f32 %v313_v55, %v325_v1  ;;  %v329_v5 = vrot.slane %v328_v2, 2 }
 0x3c3   :  { %v335_v9 = vmul.f32 1.442695, %v333_v4  ;;  %v330_v10 = vmax.f32 %v328_v2, %v329_v5 }
 0x3c5   :  { %578 = vpow2.f32 %v335_v9  ;;  %v331_v11 = vrot.slane %v330_v10, 1 }
 0x3c7   :  { %v332_v15 = vmax.f32 %v330_v10, %v331_v11 }
 0x3c9   :  { %v334_v17 = vsub.f32 %v315_v61, %v332_v15 }
 0x3cb   :  { %v579_v18 = vpop.eup %578  ;;  %v337_v19 = vmul.f32 1.442695, %v334_v17 }
 0x3cc   :  { %v339_v20 = vsel %vm318_vm7, %v579_v18, 0.0 }
 0x3cd   :  { %v340_v21 = vrot.slane %v339_v20, 4  ;;  %580 = vpow2.f32 %v337_v19 }
 0x3cf   :  { %v341_v22 = vadd.f32 %v340_v21, %v339_v20 }
 0x3d1   :  { %v342_v23 = vrot.slane %v341_v22, 2 }
 0x3d3   :  { %v581_v24 = vpop.eup %580  ;;  %v343_v25 = vadd.f32 %v342_v23, %v341_v22 }
 0x3d4   :  { %v346_v26 = vsel %vm318_vm7, %v581_v24, 0.0 }
 0x3d5   :  { %v347_v27 = vrot.slane %v346_v26, 4  ;;  %v344_v28 = vrot.slane %v343_v25, 1 }
 0x3d7   :  { %v348_v29 = vadd.f32 %v347_v27, %v346_v26  ;;  %v345_v31 = vadd.f32 %v344_v28, %v343_v25 }
 0x3d9   :  { %v349_v30 = vrot.slane %v348_v29, 2  ;;  %582 = vrcp.f32 %v345_v31 }
 0x3db   :  { %v350_v32 = vadd.f32 %v349_v30, %v348_v29 }
 0x3dd   :  { %v351_v33 = vrot.slane %v350_v32, 1 }
 0x3df   :  { %v352_v34 = vadd.f32 %v351_v33, %v350_v32  ;;  %v583_v35 = vpop.eup %582  ;;  %v570_v32 = vld [vmem:[%s821_s4 + $0x8] ss:$0 sm:$0xff] }
 0x3e0   :  { %v355_v38 = vmul.f32 %v583_v35, %v579_v18 }
 0x3e1   :  { %584 = vrcp.f32 %v352_v34 }
 0x3e7   :  { %v585_v36 = vpop.eup %584 }
 0x3e8   :  { %v356_v37 = vmul.f32 %v585_v36, %v581_v24 }
 0x3ea   :  { %v357_v39 = vpack.c.bf16 %v356_v37, %v355_v38 }
 0x3ec   :  { %534 = vmatmul.msk.bf16.vlgmr.msrb.gmra.mxu2 %vm318_vm7, %v357_v39 }
 0x46f   :  { %v374_v50 = vpop.f32.mrf.mxu2 }
 0x470   :  { %v379_v51 = vmul.f32 %v374_v50, %v288_v49 }
 0x472   :  { %v381_v52 = vsel %vm90_vm0, %v379_v51, 0.0 }
 0x473   :  { %v382_v54 = vrot.slane %v381_v52, 4 }
 0x475   :  { %v383_v55 = vadd.f32 %v382_v54, %v381_v52 }
 0x477   :  { %v384_v57 = vrot.slane %v383_v55, 2  ;;  %v376_v58 = vpop.f32.mrf.mxu2 }
 0x478   :  { %v380_v59 = vmul.f32 %v376_v58, %v290_v56 }
 0x479   :  { %v385_v60 = vadd.f32 %v384_v57, %v383_v55 }
 0x47a   :  { %v388_v61 = vsel %vm90_vm0, %v380_v59, 0.0 }
 0x47b   :  { %v389_v62 = vrot.slane %v388_v61, 4  ;;  %v386_v63 = vrot.slane %v385_v60, 1 }
 0x47d   :  { %v390_v0 = vadd.f32 %v389_v62, %v388_v61  ;;  %v387_v2 = vadd.f32 %v386_v63, %v385_v60 }
 0x47f   :  { %v391_v1 = vrot.slane %v390_v0, 2  ;;  %v399_v5 = vpack.c.bf16 %v387_v2, %v387_v2 }
 0x481   :  { %v392_v3 = vadd.f32 %v391_v1, %v390_v0  ;;  %v404_v9 = vunpack.c.l.b16 %v399_v5 }
 0x483   :  { %v393_v4 = vrot.slane %v392_v3, 1 }
 0x485   :  { %v394_v7 = vadd.f32 %v393_v4, %v392_v3 }
 0x487   :  { %v400_v8 = vpack.c.bf16 %v394_v7, %v394_v7 }
 0x489   :  { %v405_v10 = vunpack.c.l.b16 %v400_v8 }
 0x48b   :  { %v407_v11 = vsel %vm406_vm12, %v405_v10, %v404_v9 }
 0x48c   :  { %v408_v12 = vpack.c.b16 %v407_v11, %v407_v11 }
 0x48e   :  { %543 = vmatmul.msk.bf16.vlgmr.msrb.gmra.mxu3 %vm90_vm0, %v408_v12 }
 0x511   :  { %v433_v14 = vpop.f32.mrf.mxu3 }
 0x512   :  { %v434_v15 = vadd.f32 %v569_v13, %v433_v14 }
 0x514   :  { %v437_v16 = vadd.f32 %v434_v15, %v700_v6 }
 0x516   :  { %v439_v17 = vsel %vm438_vm13, %v437_v16, 0.0 }
 0x517   :  { %440 = vadd.xlane.f32.xlu0 %v439_v17 }
 0x519   :  { %v435_v18 = vpop.f32.mrf.mxu3 }
 0x58a   :  { %v441_v19 = vpop.xlane.xlu0 %440 }
 0x58b   :  { %v442_v20 = vmul.f32 %v441_v19, %v745_v48 }
 0x58d   :  { %v443_v21 = vsub.f32 %v437_v16, %v442_v20 }
 0x58f   :  { %v444_v22 = vmul.f32 %v443_v21, %v443_v21 }
 0x591   :  { %v445_v23 = vsel %vm438_vm13, %v444_v22, 0.0 }
 0x592   :  { %446 = vadd.xlane.f32.xlu1 %v445_v23 }
 0x605   :  { %v447_v6 = vpop.xlane.xlu1 %446 }
 0x606   :  { %v448_v24 = vmul.f32 %v447_v6, %v745_v48  ;;  %v571_v48 = vld [vmem:[%s821_s4 + $0x9] ss:$0 sm:$0xff] }
 0x608   :  { %v449_v25 = vadd.f32 1e-05, %v448_v24 }
 0x60a   :  { %586 = vrsqrt.f32 %v449_v25  ;;  %vm456_vm14 = vweird.f32 %v449_v25 }
 0x610   :  { %v587_v26 = vpop.eup %586 }
 0x611   :  { %v451_v27 = vmul.f32 %v587_v26, %v449_v25  ;;  %vm457_vm0 = vweird.f32 %v587_v26 }
 0x612   :  { %vm458_vm15 = vmor %vm456_vm14, %vm457_vm0 }
 0x613   :  { %v452_v28 = vmul.f32 %v587_v26, %v451_v27 }
 0x615   :  { %v453_v29 = vmul.f32 0.5, %v452_v28 }
 0x617   :  { %v454_v30 = vsub.f32 1.5, %v453_v29 }
 0x619   :  { %v455_v31 = vmul.f32 %v587_v26, %v454_v30 }
 0x61b   :  { %v459_v33 = vsel %vm458_vm15, %v587_v26, %v455_v31 }
 0x61c   :  { %v460_v34 = vmul.f32 %v459_v33, %v443_v21 }
 0x61e   :  { %v462_v35 = vmul.f32 %v570_v32, %v460_v34 }
 0x620   :  { %v464_v36 = vadd.f32 %v571_v48, %v462_v35 }
 0x622   :  { %465 = vst.msk [vmem:[#allocation2] sm:$0x3] %vm438_vm13, %v464_v36 }
 0x623   :  { %476 = dma.vmem_to_hbm [thread:$0]  %s472_s9, 32, %s474_s12, [#allocation3]  }
 0x624   :  { %636 = dma.done.wait [#allocation3], 32  }
 0x625   :  { %637 = vsyncadd [#allocation3], 4294967264 }
 0x626   :  { %638 = dma.done.wait [#allocation5], 256  }
 0x627   :  { %639 = vsyncadd [#allocation5], 4294967040 }
 0x628   :  { %498 = vsyncpa [#allocation3], 1 }
 0x629   :  { %499 = vsyncpa [#allocation5], 1 }

</bundles_post_ra>
